<compile_context>
chip_gen: v7x
topology: tpu7x:2x2x1
jax: 0.10.0
libtpu: 0.0.40
codegen_flags: <defaults>
</compile_context>

<pallas_src>
import functools

import jax
import jax.numpy as jnp
from jax.experimental import pallas as pl
from jax.experimental.pallas import tpu as pltpu


def _round_up(x, m):
    return (x + m - 1) // m * m


def patch_embed_kernel(x_ref, w_ref, b_ref, o_ref):
    # x_ref: [TM, K] (compute dtype)   w_ref: [K, E] (compute dtype, VMEM-resident)
    # b_ref: [1, E]  (f32)             o_ref: [TM, E] (out dtype)
    acc = jnp.dot(x_ref[...], w_ref[...], preferred_element_type=jnp.float32)
    o_ref[...] = (acc + b_ref[...]).astype(o_ref.dtype)


def prepare_patch_embed_params(weight, bias, compute_dtype=jnp.bfloat16):
    """Flatten / transpose the conv weight once, outside the hot path.

    weight: [E, C, P, P] (OIHW conv weight), bias: [E]
    Returns w_ke [K, E] in compute_dtype and b [1, E] in f32, *unpadded*:
    padding K wastes MXU passes (v5e is compute-bound) and padding E wastes HBM
    writeback; Mosaic handles non-128 lane widths via masking, and standard ViT
    widths (768 / 1024 / 1280) are already 256-aligned anyway.
    """
    E, C, P, _ = weight.shape
    K = C * P * P
    w = weight.reshape(E, K).T.astype(compute_dtype)  # [K, E]
    b = bias.astype(jnp.float32).reshape(1, E)
    return w, b


def _resident_spec(shape, single_buffer):
    """BlockSpec for an operand whose block never changes across the grid."""
    index_map = lambda i: (0,) * len(shape)
    if single_buffer:
        # Constant index_map -> fetched exactly once; a single pipeline buffer
        # halves its resident VMEM footprint (ViT-L weight: ~2 MiB -> ~1 MiB).
        return pl.BlockSpec(shape, index_map, pipeline_mode=pl.Buffered(1))
    return pl.BlockSpec(shape, index_map)


@functools.partial(
    jax.jit,
    static_argnames=("patch_size", "embed_dim", "tile_m", "compute_dtype",
                     "out_dtype", "single_buffer_params"))
def _patch_embed_impl(x, w_ke, b_e, *, patch_size, embed_dim, tile_m,
                      compute_dtype, out_dtype, single_buffer_params):
    B, C, H, W = x.shape
    P = patch_size
    assert H % P == 0 and W % P == 0, "image size must be divisible by patch size"
    Hn, Wn = H // P, W // P
    N = Hn * Wn
    M = B * N
    K = C * P * P
    E = embed_dim
    assert w_ke.shape == (K, E) and b_e.shape == (1, E)

    # ---- tile selection ------------------------------------------------------
    # Large TM amortizes the ~0.35us/grid-step overhead (512+ already reaches
    # ~85% of HBM roofline on v6e).  For M > 128 cap TM so the grid has >= 2
    # steps: the "parallel" M axis can then split across both TensorCores on
    # v7x; on single-TC v5e/v6e the extra step costs only ~0.35us.
    if M <= 128:
        TM = M                      # single block, exact fit (full-dim block)
    else:
        TM = min(tile_m, _round_up(pl.cdiv(M, 2), 128))
    grid_m = pl.cdiv(M, TM)

    # ---- patch extraction (im2col) -------------------------------------------
    # Cast to the compute dtype FIRST so that, if the relayout does materialize,
    # it moves 2-byte data.  With no pad ops in this chain, allow_input_fusion
    # gives XLA the best chance to fold the reshape/transpose into the kernel's
    # input DMA instead of a separate HBM round trip.
    # TODO(synk): if HLO still shows a standalone transpose for your shapes,
    # restructure to read native (1, C, P, W) NCHW slabs per (b, hn) grid step
    # and do the patch relayout in VMEM.
    patches = x.astype(compute_dtype)
    patches = patches.reshape(B, C, Hn, P, Wn, P)
    patches = patches.transpose(0, 2, 4, 1, 3, 5)   # [B, Hn, Wn, C, P, P]
    patches = patches.reshape(M, K)

    comp_bytes = jnp.dtype(compute_dtype).itemsize
    out_bytes = jnp.dtype(out_dtype).itemsize

    # Scoped-VMEM budget: actual working set with headroom, capped at 48 MiB so
    # a tile tuned on v5e/v6e (128 MiB VMEM) cannot blow past v7x's 64 MiB/TC.
    working = (2 * TM * K * comp_bytes       # LHS double buffer
               + 2 * TM * E * out_bytes      # output double buffer
               + 2 * K * E * comp_bytes      # weight (worst case double buffered)
               + 2 * E * 4)                  # bias
    vmem_limit = int(min(48 * 1024 * 1024, max(32 * 1024 * 1024, 2 * working)))

    cost = pl.CostEstimate(
        flops=2 * M * K * E,
        transcendentals=0,
        bytes_accessed=(M * K * comp_bytes + K * E * comp_bytes + E * 4
                        + M * E * out_bytes))

    out = pl.pallas_call(
        patch_embed_kernel,
        out_shape=jax.ShapeDtypeStruct((M, E), out_dtype),
        grid_spec=pltpu.PrefetchScalarGridSpec(
            num_scalar_prefetch=0,
            grid=(grid_m,),
            in_specs=[
                # LHS tiles stream along M through the double-buffer pipeline.
                pl.BlockSpec((TM, K), lambda i: (i, 0)),
                # Weight + bias stay resident in VMEM across all grid steps.
                _resident_spec((K, E), single_buffer_params),
                _resident_spec((1, E), single_buffer_params),
            ],
            out_specs=pl.BlockSpec((TM, E), lambda i: (i, 0)),
        ),
        compiler_params=pltpu.CompilerParams(
            # Independent M tiles -> megacore can split the grid on v7x.
            dimension_semantics=("parallel",),
            # Fold the patch reshape/transpose producer into the input DMA.
            allow_input_fusion=[True, False, False],
            vmem_limit_bytes=vmem_limit,
        ),
        cost_estimate=cost,
    )(patches, w_ke, b_e)

    return out.reshape(B, N, E)


_SINGLE_BUFFER_OK = None  # resolved by a one-time feature probe on first call


def patch_embed(x, w_ke, b_e, *, patch_size, embed_dim, tile_m=1024,
                compute_dtype=jnp.bfloat16, out_dtype=None):
    """x: [B, C, H, W] (NCHW); w_ke/b_e from prepare_patch_embed_params.

    Returns [B, num_patches, embed_dim].  The output dtype defaults to
    compute_dtype (bf16) -- the f32 writeback is otherwise the largest HBM
    stream; pass out_dtype=x.dtype if the consumer needs full f32.
    """
    global _SINGLE_BUFFER_OK
    if out_dtype is None:
        out_dtype = compute_dtype
    kwargs = dict(patch_size=patch_size, embed_dim=embed_dim, tile_m=tile_m,
                  compute_dtype=compute_dtype, out_dtype=out_dtype)
    if _SINGLE_BUFFER_OK is None:
        try:
            out = _patch_embed_impl(x, w_ke, b_e, single_buffer_params=True,
                                    **kwargs)
            out = jax.block_until_ready(out)
            _SINGLE_BUFFER_OK = True
            return out
        except Exception:
            # pl.Buffered(1) not accepted by this JAX build / lowering; fall
            # back to default double buffering (costs one extra copy of W in
            # VMEM, everything else identical).
            _SINGLE_BUFFER_OK = False
    return _patch_embed_impl(x, w_ke, b_e,
                             single_buffer_params=_SINGLE_BUFFER_OK, **kwargs)


if __name__ == "__main__":
    # Small shapes consistent with the module: img_size=16, patch_size=4,
    # in_chans=4, embed_dim=32.
    B, C, H, W = 2, 4, 16, 16
    P = 4
    E = 32

    key = jax.random.PRNGKey(0)
    kx, kw, kb = jax.random.split(key, 3)

    x = jax.random.normal(kx, (B, C, H, W), dtype=jnp.float32)
    weight = jax.random.normal(kw, (E, C, P, P), dtype=jnp.float32) * 0.02
    bias = jax.random.normal(kb, (E,), dtype=jnp.float32) * 0.02

    w_ke, b_e = prepare_patch_embed_params(weight, bias)
    out = patch_embed(x, w_ke, b_e, patch_size=P, embed_dim=E)
    out = jax.block_until_ready(out)

    # Cross-check against a plain-JAX reference (strided conv == patch matmul).
    ref = jax.lax.conv_general_dilated(
        x, weight, window_strides=(P, P), padding="VALID",
        dimension_numbers=("NCHW", "OIHW", "NCHW"))
    ref = ref + bias.reshape(1, E, 1, 1)
    ref = ref.reshape(B, E, -1).transpose(0, 2, 1)

    assert out.shape == (B, (H // P) * (W // P), E)
    # bf16 compute + bf16 output vs f32 conv reference -> loose tolerance.
    assert jnp.allclose(out.astype(jnp.float32), ref, atol=2e-2, rtol=2e-2), (
        float(jnp.max(jnp.abs(out.astype(jnp.float32) - ref))))

    print("KERNEL_OK")
</pallas_src>

<mosaic_0001>
module attributes {stable_mosaic.version = 11 : i64} {
  func.func @patch_embed_kernel(%arg0: i32, %arg1: memref<32x64xbf16, #tpu.memory_space<vmem>>, %arg2: memref<64x32xbf16, #tpu.memory_space<vmem>>, %arg3: memref<1x32xf32, #tpu.memory_space<vmem>>, %arg4: memref<32x32xbf16, #tpu.memory_space<vmem>>) attributes {dimension_semantics = [#tpu.dimension_semantics<parallel>], iteration_bounds = array<i64: 1>, scalar_prefetch = 0 : i64, scratch_operands = 0 : i64, tpu.core_type = #tpu.core_type<tc>, window_params = [{transform_indices = @transform_0, window_bounds = array<i64: 32, 64>}, {pipeline_mode = #tpu.pipeline_mode<synchronous>, transform_indices = @transform_1, window_bounds = array<i64: 64, 32>}, {pipeline_mode = #tpu.pipeline_mode<synchronous>, transform_indices = @transform_2, window_bounds = array<i64: 1, 32>}, {transform_indices = @transform_3, window_bounds = array<i64: 32, 32>}]} {
    %c0 = arith.constant 0 : index
    %c0_0 = arith.constant 0 : index
    %0 = vector.load %arg1[%c0, %c0_0] : memref<32x64xbf16, #tpu.memory_space<vmem>>, vector<32x64xbf16>
    %c0_1 = arith.constant 0 : index
    %c0_2 = arith.constant 0 : index
    %1 = vector.load %arg2[%c0_1, %c0_2] : memref<64x32xbf16, #tpu.memory_space<vmem>>, vector<64x32xbf16>
    %cst = arith.constant dense<0.000000e+00> : vector<32x32xf32>
    %2 = tpu.matmul %0, %1, %cst {dimension_numbers = #tpu.dot_dimension_numbers<[1], [0], [0], [1], [0, 0, 1, 1], [], []>} : vector<32x64xbf16>, vector<64x32xbf16>, vector<32x32xf32> -> vector<32x32xf32>
    %c0_3 = arith.constant 0 : index
    %c0_4 = arith.constant 0 : index
    %3 = vector.load %arg3[%c0_3, %c0_4] : memref<1x32xf32, #tpu.memory_space<vmem>>, vector<1x32xf32>
    %4 = vector.broadcast %3 : vector<1x32xf32> to vector<32x32xf32>
    %5 = arith.addf %2, %4 : vector<32x32xf32>
    %6 = arith.truncf %5 : vector<32x32xf32> to vector<32x32xbf16>
    %c0_5 = arith.constant 0 : index
    %c0_6 = arith.constant 0 : index
    %7 = vector.load %arg4[%c0_5, %c0_6] : memref<32x32xbf16, #tpu.memory_space<vmem>>, vector<32x32xbf16>
    tpu.vector_store %arg4[%c0_5, %c0_6], %6 {strides = array<i32>} : memref<32x32xbf16, #tpu.memory_space<vmem>>, vector<32x32xbf16>,
    return
  }
  func.func @transform_0(%arg0: i32) -> (i32, i32) {
    %c0_i32 = arith.constant 0 : i32
    %c0_i32_0 = arith.constant 0 : i32
    return %arg0, %c0_i32 : i32, i32
  }
  func.func @transform_1(%arg0: i32) -> (i32, i32) {
    %c0_i32 = arith.constant 0 : i32
    %c0_i32_0 = arith.constant 0 : i32
    %c0_i32_1 = arith.constant 0 : i32
    return %c0_i32, %c0_i32_0 : i32, i32
  }
  func.func @transform_2(%arg0: i32) -> (i32, i32) {
    %c0_i32 = arith.constant 0 : i32
    %c0_i32_0 = arith.constant 0 : i32
    %c0_i32_1 = arith.constant 0 : i32
    return %c0_i32, %c0_i32_0 : i32, i32
  }
  func.func @transform_3(%arg0: i32) -> (i32, i32) {
    %c0_i32 = arith.constant 0 : i32
    %c0_i32_0 = arith.constant 0 : i32
    return %arg0, %c0_i32 : i32, i32
  }
}

module attributes {stable_mosaic.version = 11 : i64} {
  func.func @patch_embed_kernel(%arg0: i32, %arg1: memref<32x64xbf16, #tpu.memory_space<vmem>>, %arg2: memref<64x32xbf16, #tpu.memory_space<vmem>>, %arg3: memref<1x32xf32, #tpu.memory_space<vmem>>, %arg4: memref<32x32xbf16, #tpu.memory_space<vmem>>) attributes {dimension_semantics = [#tpu.dimension_semantics<parallel>], iteration_bounds = array<i64: 1>, scalar_prefetch = 0 : i64, scratch_operands = 0 : i64, tpu.core_type = #tpu.core_type<tc>, window_params = [{transform_indices = @transform_0, window_bounds = array<i64: 32, 64>}, {pipeline_mode = #tpu.pipeline_mode<synchronous>, transform_indices = @transform_1, window_bounds = array<i64: 64, 32>}, {pipeline_mode = #tpu.pipeline_mode<synchronous>, transform_indices = @transform_2, window_bounds = array<i64: 1, 32>}, {transform_indices = @transform_3, window_bounds = array<i64: 32, 32>}]} {
    %c0 = arith.constant 0 : index
    %c0_0 = arith.constant 0 : index
    %0 = vector.load %arg1[%c0, %c0_0] : memref<32x64xbf16, #tpu.memory_space<vmem>>, vector<32x64xbf16>
    %c0_1 = arith.constant 0 : index
    %c0_2 = arith.constant 0 : index
    %1 = vector.load %arg2[%c0_1, %c0_2] : memref<64x32xbf16, #tpu.memory_space<vmem>>, vector<64x32xbf16>
    %cst = arith.constant dense<0.000000e+00> : vector<32x32xf32>
    %2 = tpu.matmul %0, %1, %cst {dimension_numbers = #tpu.dot_dimension_numbers<[1], [0], [0], [1], [0, 0, 1, 1], [], []>} : vector<32x64xbf16>, vector<64x32xbf16>, vector<32x32xf32> -> vector<32x32xf32>
    %c0_3 = arith.constant 0 : index
    %c0_4 = arith.constant 0 : index
    %3 = vector.load %arg3[%c0_3, %c0_4] : memref<1x32xf32, #tpu.memory_space<vmem>>, vector<1x32xf32>
    %4 = vector.broadcast %3 : vector<1x32xf32> to vector<32x32xf32>
    %5 = arith.addf %2, %4 : vector<32x32xf32>
    %6 = arith.truncf %5 : vector<32x32xf32> to vector<32x32xbf16>
    %c0_5 = arith.constant 0 : index
    %c0_6 = arith.constant 0 : index
    %7 = vector.load %arg4[%c0_5, %c0_6] : memref<32x32xbf16, #tpu.memory_space<vmem>>, vector<32x32xbf16>
    tpu.vector_store %arg4[%c0_5, %c0_6], %6 {strides = array<i32>} : memref<32x32xbf16, #tpu.memory_space<vmem>>, vector<32x32xbf16>,
    return
  }
  func.func @transform_0(%arg0: i32) -> (i32, i32) {
    %c0_i32 = arith.constant 0 : i32
    %c0_i32_0 = arith.constant 0 : i32
    return %arg0, %c0_i32 : i32, i32
  }
  func.func @transform_1(%arg0: i32) -> (i32, i32) {
    %c0_i32 = arith.constant 0 : i32
    %c0_i32_0 = arith.constant 0 : i32
    %c0_i32_1 = arith.constant 0 : i32
    return %c0_i32, %c0_i32_0 : i32, i32
  }
  func.func @transform_2(%arg0: i32) -> (i32, i32) {
    %c0_i32 = arith.constant 0 : i32
    %c0_i32_0 = arith.constant 0 : i32
    %c0_i32_1 = arith.constant 0 : i32
    return %c0_i32, %c0_i32_0 : i32, i32
  }
  func.func @transform_3(%arg0: i32) -> (i32, i32) {
    %c0_i32 = arith.constant 0 : i32
    %c0_i32_0 = arith.constant 0 : i32
    return %arg0, %c0_i32 : i32, i32
  }
}

</mosaic_0001>

<bundles_post_ra>
// kernel: _patch_embed_impl.1
= control target key start
LH: loop header
LB: loop body
LE: loop exit
PB: predicated region body
PF: predicated region fallthrough
CT: control target
= control target key end

     0   :  { %vm69_vm0 = vcmask 523264   ;;  %s290_s0 = inlined_call_operand.vmem [shape: bf16[32,64], index: 0, kind: input, shape index: {}]   ;;  %s291_s1 = inlined_call_operand.vmem [shape: bf16[64,32], index: 1, kind: input, shape index: {}]   ;;  %s292_s2 = inlined_call_operand.vmem [shape: f32[1,32], index: 2, kind: input, shape index: {}]   ;;  %s293_s3 = inlined_call_operand.hbm [shape: bf16[32,32], index: 3, kind: output, shape index: {}]  }
   0x1   :  { %v200_v0 = vld [vmem:[%s291_s1] sm:$0xff]   ;;  %v201_v1 = vld [vmem:[%s291_s1 + $0x8] sm:$0xff]   ;;  %v202_v2 = vld [vmem:[%s291_s1 + $0x10] sm:$0xff]  }
   0x2   :  { %185 = vmatprep.subr.bf16.mxu0 %v200_v0  ;;  %v204_v3 = vld [vmem:[%s290_s0] sm:$0xff]  }
   0x3   :  { %186 = vmatpush3.bf16.msra.mxu0 %v200_v0  ;;  %193 = vmatprep.mubr.msk.bf16.mxu0 %vm69_vm0, %v204_v3 }
   0x4   :  { %187 = vmatprep.subr.bf16.mxu0 %v201_v1 }
   0x5   :  { %8 = vsyncpa [#allocation3], 0  ;;  %v203_v4 = vld [vmem:[%s291_s1 + $0x18] sm:$0xff]   ;;  %v205_v5 = vld [vmem:[%s290_s0 + $0x8] sm:$0xff]   ;;  %vm141_vm1 = vcmask 257024   ;;  %s230_s26 = smov [#allocation2]  }
   0x6   :  { %v162_v6 = vld [vmem:[%s292_s2] ss:$0 sm:$0xff]  ;;  %s151_s1 = sshll.u32 %s230_s26, 4  ;;  %s152_s1 = int_to_ptr.vmem [resolvable:$true] %s151_s1 }
   0x7   :  { %188 = vmatpush3.bf16.msra.mxu0 %v201_v1  ;;  %s206_s0 = scalar_lea.vmem %s152_s1, 256  ;;  %p211_p1 = scmp.lt.s32.totalorder %s152_s1, %s152_s1 }
   0x8   :  { %189 = vmatprep.subr.bf16.mxu0 %v202_v2  ;;  %p207_p0 = scmp.ne.s32.totalorder %s152_s1, %s206_s0  ;;  %p212_p2 = scmp.lt.s32.totalorder %s206_s0, %s206_s0 }
   0xa   :  { %p213_p3 = por %p212_p2, %p211_p1 }
   0xb   :  { %190 = vmatpush3.bf16.msra.mxu0 %v202_v2 }
   0xc   :  { %191 = vmatprep.subr.bf16.mxu0 %v203_v4  ;;  %p214_p4 = pnand %p213_p3, %p207_p0 }
   0xf   :  { %192 = vmatpush3.bf16.msra.mxu0 %v203_v4 }
  0x12   :  { %194 = vmatmul.mubr.msk.bf16.vlgmr.msra.gmra.mrb[0].mxu0 %vm69_vm0, %v205_v5 }
  0xe5   :  { %v195_v7 = vpop.f32.mrb[0].mxu0 }
  0xe6   :  { %v119_v8 = vadd.f32 %v195_v7, %v162_v6  ;;  %v110_v9 = vpop.f32.mrb[1].mxu0 }
  0xe7   :  { %v111_v10 = vadd.f32 %v162_v6, %v110_v9  ;;  %v196_v11 = vpop.f32.mrb[2].mxu0 }
  0xe8   :  { %v177_v12 = vpack.c.bf16 %v119_v8, %v119_v8  ;;  %v122_v13 = vadd.f32 %v196_v11, %v162_v6  ;;  %v113_v14 = vpop.f32.mrb[3].mxu0 }
  0xe9   :  { %v175_v15 = vpack.c.bf16 %v111_v10, %v111_v10  ;;  %v114_v16 = vadd.f32 %v162_v6, %v113_v14 }
  0xea   :  { %144 = vst.msk [vmem:[#allocation2 + $0x8] sm:$0xf] %vm141_vm1, %v177_v12  ;;  %v178_v17 = vpack.c.bf16 %v122_v13, %v122_v13 }
  0xeb   :  { %142 = vst.msk [vmem:[#allocation2] sm:$0xf] %vm141_vm1, %v175_v15  ;;  %v176_v18 = vpack.c.bf16 %v114_v16, %v114_v16 }
  0xec   :  { %145 = vst.msk [vmem:[#allocation2 + $0xc] sm:$0xf] %vm141_vm1, %v178_v17 }
  0xed   :  { %143 = vst.msk [vmem:[#allocation2 + $0x4] sm:$0xf] %vm141_vm1, %v176_v18 }
  0xee   :  { %217 = shalt.err (!%p214_p4)
}
  0xef   :  { %s218_s28 = scalar_lea.hbm %s293_s3, 256 }
  0xf0   :  { %p219_p5 = scmp.ne.s32.totalorder %s293_s3, %s218_s28  ;;  %p222_p6 = scmp.lt.u32.totalorder %s218_s28, %s293_s3 }
  0xf2   :  { %p224_p7 = pnand %p222_p6, %p219_p5 }
  0xf4   :  { %227 = shalt.err (!%p224_p7)
}
  0xf5   :  { %s231_s6 = smov 64   ;;  %s232_s7 = smov 4  }
  0xf6   :  { %157 = dma.vmem_to_hbm [thread:$0]  %s152_s1, 256, %s293_s3, [#allocation3], %s231_s6, %s231_s6, %s232_s7  }
  0xf7   :  { %228 = dma.done.wait [#allocation3], 256  }
  0xf8   :  { %229 = vsyncadd [#allocation3], 4294967040 }
  0xf9   :  { %161 = vsyncpa [#allocation3], 1 }

// kernel: _patch_embed_impl.1
= control target key start
LH: loop header
LB: loop body
LE: loop exit
PB: predicated region body
PF: predicated region fallthrough
CT: control target
= control target key end

     0   :  { %vm69_vm0 = vcmask 523264   ;;  %s290_s0 = inlined_call_operand.vmem [shape: bf16[32,64], index: 0, kind: input, shape index: {}]   ;;  %s291_s1 = inlined_call_operand.vmem [shape: bf16[64,32], index: 1, kind: input, shape index: {}]   ;;  %s292_s2 = inlined_call_operand.vmem [shape: f32[1,32], index: 2, kind: input, shape index: {}]   ;;  %s293_s3 = inlined_call_operand.hbm [shape: bf16[32,32], index: 3, kind: output, shape index: {}]  }
   0x1   :  { %v200_v0 = vld [vmem:[%s291_s1] sm:$0xff]   ;;  %v201_v1 = vld [vmem:[%s291_s1 + $0x8] sm:$0xff]   ;;  %v202_v2 = vld [vmem:[%s291_s1 + $0x10] sm:$0xff]  }
   0x2   :  { %185 = vmatprep.subr.bf16.mxu0 %v200_v0  ;;  %v204_v3 = vld [vmem:[%s290_s0] sm:$0xff]  }
   0x3   :  { %186 = vmatpush3.bf16.msra.mxu0 %v200_v0  ;;  %193 = vmatprep.mubr.msk.bf16.mxu0 %vm69_vm0, %v204_v3 }
   0x4   :  { %187 = vmatprep.subr.bf16.mxu0 %v201_v1 }
   0x5   :  { %8 = vsyncpa [#allocation3], 0  ;;  %v203_v4 = vld [vmem:[%s291_s1 + $0x18] sm:$0xff]   ;;  %v205_v5 = vld [vmem:[%s290_s0 + $0x8] sm:$0xff]   ;;  %vm141_vm1 = vcmask 257024   ;;  %s230_s26 = smov [#allocation2]  }
   0x6   :  { %v162_v6 = vld [vmem:[%s292_s2] ss:$0 sm:$0xff]  ;;  %s151_s1 = sshll.u32 %s230_s26, 4  ;;  %s152_s1 = int_to_ptr.vmem [resolvable:$true] %s151_s1 }
   0x7   :  { %188 = vmatpush3.bf16.msra.mxu0 %v201_v1  ;;  %s206_s0 = scalar_lea.vmem %s152_s1, 256  ;;  %p211_p1 = scmp.lt.s32.totalorder %s152_s1, %s152_s1 }
   0x8   :  { %189 = vmatprep.subr.bf16.mxu0 %v202_v2  ;;  %p207_p0 = scmp.ne.s32.totalorder %s152_s1, %s206_s0  ;;  %p212_p2 = scmp.lt.s32.totalorder %s206_s0, %s206_s0 }
   0xa   :  { %p213_p3 = por %p212_p2, %p211_p1 }
   0xb   :  { %190 = vmatpush3.bf16.msra.mxu0 %v202_v2 }
   0xc   :  { %191 = vmatprep.subr.bf16.mxu0 %v203_v4  ;;  %p214_p4 = pnand %p213_p3, %p207_p0 }
   0xf   :  { %192 = vmatpush3.bf16.msra.mxu0 %v203_v4 }
  0x12   :  { %194 = vmatmul.mubr.msk.bf16.vlgmr.msra.gmra.mrb[0].mxu0 %vm69_vm0, %v205_v5 }
  0xe5   :  { %v195_v7 = vpop.f32.mrb[0].mxu0 }
  0xe6   :  { %v119_v8 = vadd.f32 %v195_v7, %v162_v6  ;;  %v110_v9 = vpop.f32.mrb[1].mxu0 }
  0xe7   :  { %v111_v10 = vadd.f32 %v162_v6, %v110_v9  ;;  %v196_v11 = vpop.f32.mrb[2].mxu0 }
  0xe8   :  { %v177_v12 = vpack.c.bf16 %v119_v8, %v119_v8  ;;  %v122_v13 = vadd.f32 %v196_v11, %v162_v6  ;;  %v113_v14 = vpop.f32.mrb[3].mxu0 }
  0xe9   :  { %v175_v15 = vpack.c.bf16 %v111_v10, %v111_v10  ;;  %v114_v16 = vadd.f32 %v162_v6, %v113_v14 }
  0xea   :  { %144 = vst.msk [vmem:[#allocation2 + $0x8] sm:$0xf] %vm141_vm1, %v177_v12  ;;  %v178_v17 = vpack.c.bf16 %v122_v13, %v122_v13 }
  0xeb   :  { %142 = vst.msk [vmem:[#allocation2] sm:$0xf] %vm141_vm1, %v175_v15  ;;  %v176_v18 = vpack.c.bf16 %v114_v16, %v114_v16 }
  0xec   :  { %145 = vst.msk [vmem:[#allocation2 + $0xc] sm:$0xf] %vm141_vm1, %v178_v17 }
  0xed   :  { %143 = vst.msk [vmem:[#allocation2 + $0x4] sm:$0xf] %vm141_vm1, %v176_v18 }
  0xee   :  { %217 = shalt.err (!%p214_p4)
}
  0xef   :  { %s218_s28 = scalar_lea.hbm %s293_s3, 256 }
  0xf0   :  { %p219_p5 = scmp.ne.s32.totalorder %s293_s3, %s218_s28  ;;  %p222_p6 = scmp.lt.u32.totalorder %s218_s28, %s293_s3 }
  0xf2   :  { %p224_p7 = pnand %p222_p6, %p219_p5 }
  0xf4   :  { %227 = shalt.err (!%p224_p7)
}
  0xf5   :  { %s231_s6 = smov 64   ;;  %s232_s7 = smov 4  }
  0xf6   :  { %157 = dma.vmem_to_hbm [thread:$0]  %s152_s1, 256, %s293_s3, [#allocation3], %s231_s6, %s231_s6, %s232_s7  }
  0xf7   :  { %228 = dma.done.wait [#allocation3], 256  }
  0xf8   :  { %229 = vsyncadd [#allocation3], 4294967040 }
  0xf9   :  { %161 = vsyncpa [#allocation3], 1 }

</bundles_post_ra>
